<compile_context>
chip_gen: v7x
topology: tpu7x:2x2x1
jax: 0.10.0
libtpu: 0.0.40
codegen_flags: <defaults>
</compile_context>

<pallas_src>
import math

import jax
import jax.numpy as jnp
from jax.experimental import pallas as pl
from jax.experimental.pallas import tpu as pltpu


_VMEM_LIMIT = 48 * 1024 * 1024          # fits v5e/v6e (128 MiB) and v7x (64 MiB)
_LOG2E = 1.4426950408889634


# ---------------------------------------------------------------------------
# Stage 1: row-tiled per-head projection   (rows, D) @ (H, D, dh) -> (H, rows, dh)
# ---------------------------------------------------------------------------
def _proj_kernel(x_ref, w_ref, o_ref):
    x = x_ref[...]                         # (tr, D)  bf16
    heads = o_ref.shape[0]
    for h in range(heads):                 # small static loop; per-head weight is a
        o_ref[h] = jnp.dot(                # leading-axis index (no lane sub-slicing)
            x, w_ref[h], preferred_element_type=jnp.float32
        ).astype(o_ref.dtype)


def _row_tile(rows, cap=512):
    if rows <= cap:
        return rows
    for t in range(cap, 7, -8):
        if rows % t == 0:
            return t
    return rows


def _seq_tile(length, cap=256):
    if length <= cap:
        return length
    for t in range(cap, 7, -8):
        if length % t == 0:
            return t
    return length


def _project(x2d, w_heads):
    """x2d: (R, D) bf16, w_heads: (H, D, dh) bf16 -> (H, R, dh) bf16."""
    R, D = x2d.shape
    H, _, dh = w_heads.shape
    tr = _row_tile(R)
    return pl.pallas_call(
        _proj_kernel,
        out_shape=jax.ShapeDtypeStruct((H, R, dh), jnp.bfloat16),
        grid_spec=pltpu.PrefetchScalarGridSpec(
            num_scalar_prefetch=0,
            grid=(R // tr,),
            in_specs=[
                pl.BlockSpec((tr, D), lambda r: (r, 0)),
                # constant-index weights; not re-DMA'd across the grid.
                pl.BlockSpec((H, D, dh), lambda r: (0, 0, 0)),
            ],
            out_specs=pl.BlockSpec((H, tr, dh), lambda r: (0, r, 0)),
        ),
        compiler_params=pltpu.CompilerParams(
            dimension_semantics=("parallel",),
            vmem_limit_bytes=_VMEM_LIMIT),
    )(x2d, w_heads)


# ---------------------------------------------------------------------------
# Stage 2: flash attention (online softmax) + fused output projection
# ---------------------------------------------------------------------------
def _flash_kernel(q_ref, k_ref, v_ref, wo_ref, bo_ref, o_ref,
                  m_sc, l_sc, acc_sc):
    j = pl.program_id(2)
    heads = q_ref.shape[0]

    @pl.when(j == 0)
    def _():
        m_sc[...] = jnp.full(m_sc.shape, -jnp.inf, m_sc.dtype)
        l_sc[...] = jnp.zeros(l_sc.shape, l_sc.dtype)
        acc_sc[...] = jnp.zeros(acc_sc.shape, acc_sc.dtype)

    q = q_ref[:, 0]                        # (H, tq, dh) bf16, scale*log2e folded in
    k = k_ref[:, 0]                        # (H, tk, dh) bf16
    v = v_ref[:, 0]                        # (H, tk, dh) bf16

    # Heads batched into one dot_general; contraction over dh, no transpose of k.
    s = jnp.einsum("hqd,hkd->hqk", q, k,
                   preferred_element_type=jnp.float32)      # (H, tq, tk) f32

    # TODO(synk): additive mask bias (masked_fill with -inf) would be applied to
    #             `s` here, before the running max.

    m_prev = m_sc[...]                                       # (H, tq, 1)
    m_new = jnp.maximum(m_prev, s.max(axis=-1, keepdims=True))
    alpha = jnp.exp2(m_prev - m_new)                         # rescale old state
    p = jnp.exp2(s - m_new)                                  # scores already in log2 domain
    l_sc[...] = alpha * l_sc[...] + p.sum(axis=-1, keepdims=True)
    acc_sc[...] = alpha * acc_sc[...] + jnp.einsum(
        "hqk,hkd->hqd", p.astype(jnp.bfloat16), v,
        preferred_element_type=jnp.float32)
    m_sc[...] = m_new

    @pl.when(j == pl.num_programs(2) - 1)
    def _():
        tq = o_ref.shape[1]
        dq_pad = o_ref.shape[2]
        inv_l = pl.reciprocal(l_sc[...], approx=True)        # (H, tq, 1)
        o_heads = (acc_sc[...] * inv_l).astype(jnp.bfloat16)  # (H, tq, dh)
        # Fused to_out projection: per-head weight is a leading-axis index.
        out = jnp.zeros((tq, dq_pad), jnp.float32)
        for h in range(heads):
            out = out + jnp.dot(o_heads[h], wo_ref[h],
                                preferred_element_type=jnp.float32)
        out = out + bo_ref[...]
        o_ref[0] = out.astype(o_ref.dtype)


# ---------------------------------------------------------------------------
# Wrapper
# ---------------------------------------------------------------------------
def attention_forward(x, context, params, *, heads, dim_head):
    """Pallas equivalent of Attention.forward(x, context, mask=None)."""
    B, N, Dq = x.shape
    _, M, Dc = context.shape
    H, dh = heads, dim_head
    scale = dh ** (-0.5)

    # ---- one-time parameter prep (bf16 pre-cast, scale/log2e folded into Wq) ----
    wq = (params["wq"] * (scale * _LOG2E)).astype(jnp.bfloat16)
    wq = jnp.transpose(wq.reshape(Dq, H, dh), (1, 0, 2))     # (H, Dq, dh)
    wk = jnp.transpose(params["wk"].astype(jnp.bfloat16).reshape(Dc, H, dh), (1, 0, 2))
    wv = jnp.transpose(params["wv"].astype(jnp.bfloat16).reshape(Dc, H, dh), (1, 0, 2))

    pad = (-Dq) % 128
    dq_pad = Dq + pad
    wo = params["wo"]
    bo = params["bo"]
    if pad:                                 # lane-dense output store; sliced below.
        wo = jnp.pad(wo, ((0, 0), (0, pad)))
        bo = jnp.pad(bo, ((0, 0), (0, pad)))
    wo = wo.astype(jnp.bfloat16).reshape(H, dh, dq_pad)       # (H, dh, Dq_pad)
    bo = bo.astype(jnp.float32)                               # (1, Dq_pad)

    xb = x.astype(jnp.bfloat16).reshape(B * N, Dq)
    cb = context.astype(jnp.bfloat16).reshape(B * M, Dc)

    # ---- stage 1: projections (batch folded into rows) ----
    q = _project(xb, wq).reshape(H, B, N, dh)                 # bf16
    k = _project(cb, wk).reshape(H, B, M, dh)
    v = _project(cb, wv).reshape(H, B, M, dh)

    # ---- stage 2: flash attention + fused output projection ----
    tq = _seq_tile(N)
    tk = _seq_tile(M)

    out_padded = pl.pallas_call(
        _flash_kernel,
        out_shape=jax.ShapeDtypeStruct((B, N, dq_pad), x.dtype),
        grid_spec=pltpu.PrefetchScalarGridSpec(
            num_scalar_prefetch=0,
            grid=(B, N // tq, M // tk),
            in_specs=[
                pl.BlockSpec((H, 1, tq, dh), lambda b, i, j: (0, b, i, 0)),   # q
                pl.BlockSpec((H, 1, tk, dh), lambda b, i, j: (0, b, j, 0)),   # k
                pl.BlockSpec((H, 1, tk, dh), lambda b, i, j: (0, b, j, 0)),   # v
                # constant-index weights/bias (could be pl.Buffered(1) on v7x
                # to avoid double-buffer VMEM; left default for portability).
                pl.BlockSpec((H, dh, dq_pad), lambda b, i, j: (0, 0, 0)),     # Wo
                pl.BlockSpec((1, dq_pad), lambda b, i, j: (0, 0)),            # bo
            ],
            out_specs=pl.BlockSpec((1, tq, dq_pad), lambda b, i, j: (b, i, 0)),
            scratch_shapes=[
                pltpu.VMEM((H, tq, 1), jnp.float32),    # running max
                pltpu.VMEM((H, tq, 1), jnp.float32),    # running denom
                pltpu.VMEM((H, tq, dh), jnp.float32),   # weighted-V accumulator
            ],
        ),
        compiler_params=pltpu.CompilerParams(
            dimension_semantics=("parallel", "parallel", "arbitrary"),
            vmem_limit_bytes=_VMEM_LIMIT),
    )(q, k, v, wo, bo)

    # Consumers that accept the padded layout can skip this extra HBM copy.
    return out_padded[:, :, :Dq] if pad else out_padded


# ---------------------------------------------------------------------------
# Pure-JAX reference (mirrors the PyTorch forward exactly, mask=None)
# ---------------------------------------------------------------------------
def attention_reference(x, context, params, *, heads, dim_head):
    B, N, Dq = x.shape
    _, M, Dc = context.shape
    H, dh = heads, dim_head
    scale = dh ** (-0.5)

    q = x @ params["wq"]          # (B, N, H*dh)
    k = context @ params["wk"]    # (B, M, H*dh)
    v = context @ params["wv"]    # (B, M, H*dh)

    def split_heads(t, L):
        return jnp.transpose(t.reshape(B, L, H, dh), (0, 2, 1, 3))  # (B,H,L,dh)

    q, k, v = split_heads(q, N), split_heads(k, M), split_heads(v, M)
    sim = jnp.einsum("bhid,bhjd->bhij", q, k) * scale
    attn = jax.nn.softmax(sim, axis=-1)
    out = jnp.einsum("bhij,bhjd->bhid", attn, v)
    out = jnp.transpose(out, (0, 2, 1, 3)).reshape(B, N, H * dh)
    return out @ params["wo"] + params["bo"]


# ---------------------------------------------------------------------------
# Main
# ---------------------------------------------------------------------------
if __name__ == "__main__":
    B = 2          # batch
    N = 8          # query sequence length
    M = 8          # context sequence length
    query_dim = 32
    context_dim = 32
    heads = 2
    dim_head = 16
    inner_dim = heads * dim_head

    key = jax.random.PRNGKey(0)
    kx, kc, k1, k2, k3, k4 = jax.random.split(key, 6)

    x = jax.random.normal(kx, (B, N, query_dim), dtype=jnp.float32)
    context = jax.random.normal(kc, (B, M, context_dim), dtype=jnp.float32)

    # Deterministic synthetic parameters (nn.Linear-like scaling), stored as
    # (in, out) matrices matching the stacked-heads layout.
    def linear_weight(k, fan_in, fan_out):
        bound = 1.0 / math.sqrt(fan_in)
        return jax.random.uniform(k, (fan_in, fan_out), jnp.float32,
                                  minval=-bound, maxval=bound)

    wq_full = linear_weight(k1, query_dim, inner_dim)            # to_q (no bias)
    wkv_full = linear_weight(k2, context_dim, 2 * inner_dim)     # to_kv (no bias)
    wk_full, wv_full = wkv_full[:, :inner_dim], wkv_full[:, inner_dim:]
    wo = linear_weight(k3, inner_dim, query_dim)                 # to_out weight
    bo = jax.random.uniform(k4, (1, query_dim), jnp.float32,
                            minval=-1.0 / math.sqrt(inner_dim),
                            maxval=1.0 / math.sqrt(inner_dim))   # to_out bias

    params = {
        "wq": wq_full,   # (Dq, H*dh)
        "wk": wk_full,   # (Dc, H*dh)
        "wv": wv_full,   # (Dc, H*dh)
        "wo": wo,        # (H*dh, Dq)
        "bo": bo,        # (1, Dq)
    }

    out = attention_forward(x, context, params, heads=heads, dim_head=dim_head)
    out = jax.block_until_ready(out)

    ref = attention_reference(x, context, params, heads=heads, dim_head=dim_head)
    assert out.shape == (B, N, query_dim)
    # bf16 MXU operands + approx reciprocal -> looser tolerance than pure f32.
    assert jnp.allclose(out, ref, atol=5e-2, rtol=5e-2), "mismatch vs reference"

    print("KERNEL_OK")
</pallas_src>

<mosaic_0001>
module attributes {stable_mosaic.version = 11 : i64} {
  func.func @_proj_kernel(%arg0: i32, %arg1: memref<16x32xbf16, #tpu.memory_space<vmem>>, %arg2: memref<2x32x16xbf16, #tpu.memory_space<vmem>>, %arg3: memref<2x16x16xbf16, #tpu.memory_space<vmem>>) attributes {dimension_semantics = [#tpu.dimension_semantics<parallel>], iteration_bounds = array<i64: 1>, scalar_prefetch = 0 : i64, scratch_operands = 0 : i64, tpu.core_type = #tpu.core_type<tc>, window_params = [{transform_indices = @transform_0, window_bounds = array<i64: 16, 32>}, {pipeline_mode = #tpu.pipeline_mode<synchronous>, transform_indices = @transform_1, window_bounds = array<i64: 2, 32, 16>}, {transform_indices = @transform_2, window_bounds = array<i64: 2, 16, 16>}]} {
    %c0 = arith.constant 0 : index
    %c0_0 = arith.constant 0 : index
    %0 = vector.load %arg1[%c0, %c0_0] : memref<16x32xbf16, #tpu.memory_space<vmem>>, vector<16x32xbf16>
    %c0_1 = arith.constant 0 : index
    %c0_2 = arith.constant 0 : index
    %c0_3 = arith.constant 0 : index
    %1 = vector.load %arg2[%c0_1, %c0_2, %c0_3] : memref<2x32x16xbf16, #tpu.memory_space<vmem>>, vector<1x32x16xbf16>
    %2 = vector.shape_cast %1 : vector<1x32x16xbf16> to vector<32x16xbf16>
    %cst = arith.constant dense<0.000000e+00> : vector<16x16xf32>
    %3 = tpu.matmul %0, %2, %cst {dimension_numbers = #tpu.dot_dimension_numbers<[1], [0], [0], [1], [0, 0, 1, 1], [], []>} : vector<16x32xbf16>, vector<32x16xbf16>, vector<16x16xf32> -> vector<16x16xf32>
    %4 = arith.truncf %3 : vector<16x16xf32> to vector<16x16xbf16>
    %c0_4 = arith.constant 0 : index
    %c0_5 = arith.constant 0 : index
    %c0_6 = arith.constant 0 : index
    %5 = vector.load %arg3[%c0_4, %c0_5, %c0_6] : memref<2x16x16xbf16, #tpu.memory_space<vmem>>, vector<1x16x16xbf16>
    %6 = vector.shape_cast %5 : vector<1x16x16xbf16> to vector<16x16xbf16>
    %7 = vector.shape_cast %4 : vector<16x16xbf16> to vector<1x16x16xbf16>
    tpu.vector_store %arg3[%c0_4, %c0_5, %c0_6], %7 {strides = array<i32>} : memref<2x16x16xbf16, #tpu.memory_space<vmem>>, vector<1x16x16xbf16>,
    %c1 = arith.constant 1 : index
    %c0_7 = arith.constant 0 : index
    %c0_8 = arith.constant 0 : index
    %8 = vector.load %arg2[%c1, %c0_7, %c0_8] : memref<2x32x16xbf16, #tpu.memory_space<vmem>>, vector<1x32x16xbf16>
    %9 = vector.shape_cast %8 : vector<1x32x16xbf16> to vector<32x16xbf16>
    %cst_9 = arith.constant dense<0.000000e+00> : vector<16x16xf32>
    %10 = tpu.matmul %0, %9, %cst_9 {dimension_numbers = #tpu.dot_dimension_numbers<[1], [0], [0], [1], [0, 0, 1, 1], [], []>} : vector<16x32xbf16>, vector<32x16xbf16>, vector<16x16xf32> -> vector<16x16xf32>
    %11 = arith.truncf %10 : vector<16x16xf32> to vector<16x16xbf16>
    %c1_10 = arith.constant 1 : index
    %c0_11 = arith.constant 0 : index
    %c0_12 = arith.constant 0 : index
    %12 = vector.load %arg3[%c1_10, %c0_11, %c0_12] : memref<2x16x16xbf16, #tpu.memory_space<vmem>>, vector<1x16x16xbf16>
    %13 = vector.shape_cast %12 : vector<1x16x16xbf16> to vector<16x16xbf16>
    %14 = vector.shape_cast %11 : vector<16x16xbf16> to vector<1x16x16xbf16>
    tpu.vector_store %arg3[%c1_10, %c0_11, %c0_12], %14 {strides = array<i32>} : memref<2x16x16xbf16, #tpu.memory_space<vmem>>, vector<1x16x16xbf16>,
    return
  }
  func.func @transform_0(%arg0: i32) -> (i32, i32) {
    %c0_i32 = arith.constant 0 : i32
    %c0_i32_0 = arith.constant 0 : i32
    return %arg0, %c0_i32 : i32, i32
  }
  func.func @transform_1(%arg0: i32) -> (i32, i32, i32) {
    %c0_i32 = arith.constant 0 : i32
    %c0_i32_0 = arith.constant 0 : i32
    %c0_i32_1 = arith.constant 0 : i32
    %c0_i32_2 = arith.constant 0 : i32
    return %c0_i32, %c0_i32_0, %c0_i32_1 : i32, i32, i32
  }
  func.func @transform_2(%arg0: i32) -> (i32, i32, i32) {
    %c0_i32 = arith.constant 0 : i32
    %c0_i32_0 = arith.constant 0 : i32
    %c0_i32_1 = arith.constant 0 : i32
    return %c0_i32, %arg0, %c0_i32_0 : i32, i32, i32
  }
}

</mosaic_0001>

<bundles_post_ra>
// kernel: tpu_custom_call.1
= control target key start
LH: loop header
LB: loop body
LE: loop exit
PB: predicated region body
PF: predicated region fallthrough
CT: control target
= control target key end

     0   :  { %v252_v1 = vmov 0.0   ;;  %vm253_vm0 = vmmov 0   ;;  %s303_s0 = inlined_call_operand.vmem [shape: bf16[16,32], index: 0, kind: input, shape index: {}]   ;;  %s304_s1 = inlined_call_operand.vmem [shape: bf16[2,32,16], index: 1, kind: input, shape index: {}]   ;;  %s305_s2 = inlined_call_operand.hbm [shape: bf16[2,16,16], index: 2, kind: output, shape index: {}]  }
   0x1   :  { %v223_v0 = vld [vmem:[%s304_s1] sm:$0xff]   ;;  %202 = vmatprep.subr.bf16.mxu0 %v252_v1  ;;  %210 = vmatprep.subr.bf16.mxu1 %v252_v1  ;;  %v224_v2 = vld [vmem:[%s304_s1 + $0x10] sm:$0xff]   ;;  %v225_v3 = vld [vmem:[%s304_s1 + $0x8] sm:$0xff]  }
   0x2   :  { %203 = vmatpush3.bf16.msra.mxu0 %v223_v0  ;;  %206 = vmatprep.mubr.msk.bf16.mxu0 %vm253_vm0, %v252_v1  ;;  %v226_v4 = vld [vmem:[%s304_s1 + $0x18] sm:$0xff]   ;;  %v227_v5 = vld [vmem:[%s303_s0] sm:$0xff]  }
   0x3   :  { %211 = vmatpush3.bf16.msra.mxu1 %v224_v2  ;;  %204 = vmatprep.subr.bf16.mxu0 %v252_v1 }
   0x4   :  { %212 = vmatprep.subr.bf16.mxu1 %v252_v1  ;;  %214 = vmatprep.mubr.msk.bf16.mxu1 %vm253_vm0, %v252_v1 }
   0x5   :  { %7 = vsyncpa [#allocation3], 0  ;;  %vm36_vm1 = vcmask 261120   ;;  %vm89_vm2 = vcmask 125952   ;;  %s254_s19 = smov [#allocation2]  }
   0x6   :  { %205 = vmatpush3.bf16.msra.mxu0 %v225_v3  ;;  %s166_s20 = sshll.u32 %s254_s19, 4  ;;  %s167_s20 = int_to_ptr.vmem [resolvable:$true] %s166_s20 }
   0x7   :  { %213 = vmatpush3.bf16.msra.mxu1 %v226_v4  ;;  %s228_s0 = scalar_lea.vmem %s167_s20, 256  ;;  %p233_p1 = scmp.lt.s32.totalorder %s167_s20, %s167_s20 }
   0x8   :  { %p229_p0 = scmp.ne.s32.totalorder %s167_s20, %s228_s0  ;;  %p234_p2 = scmp.lt.s32.totalorder %s228_s0, %s228_s0 }
   0x9   :  { %207 = vmatmul.mubr.msk.bf16.vlgmr.msra.gmra.mrb[0].mxu0 %vm36_vm1, %v227_v5 }
   0xa   :  { %215 = vmatmul.mubr.msk.bf16.vlgmr.msra.gmra.mrb[0].mxu1 %vm36_vm1, %v227_v5  ;;  %p235_p3 = por %p234_p2, %p233_p1 }
   0xc   :  { %p236_p4 = pnand %p235_p3, %p229_p0 }
  0xdc   :  { %v74_v6 = vpop.f32.mrb[0].mxu0 }
  0xdd   :  { %v192_v7 = vpack.c.bf16 %v74_v6, %v74_v6  ;;  %v143_v8 = vpop.f32.mrb[0].mxu1  ;;  %v208_v9 = vpop.f32.mrb[1].mxu0 }
  0xde   :  { %v194_v10 = vpack.c.bf16 %v143_v8, %v143_v8  ;;  %v216_v11 = vpop.f32.mrb[1].mxu1  ;;  %v77_v12 = vpop.f32.mrb[2].mxu0 }
  0xdf   :  { %90 = vst.msk [vmem:[#allocation2] sm:$0xf] %vm89_vm2, %v192_v7  ;;  %v193_v13 = vpack.c.bf16 %v77_v12, %v77_v12  ;;  %v146_v14 = vpop.f32.mrb[2].mxu1  ;;  %v209_v15 = vpop.f32.mrb[3].mxu0 }
  0xe0   :  { %159 = vst.msk [vmem:[#allocation2 + $0x8] sm:$0xf] %vm89_vm2, %v194_v10  ;;  %v195_v16 = vpack.c.bf16 %v146_v14, %v146_v14  ;;  %v217_v17 = vpop.f32.mrb[3].mxu1 }
  0xe1   :  { %91 = vst.msk [vmem:[#allocation2 + $0x4] sm:$0xf] %vm89_vm2, %v193_v13 }
  0xe2   :  { %160 = vst.msk [vmem:[#allocation2 + $0xc] sm:$0xf] %vm89_vm2, %v195_v16 }
  0xe3   :  { %239 = shalt.err (!%p236_p4)
}
  0xe4   :  { %s240_s22 = scalar_lea.hbm %s305_s2, 256 }
  0xe5   :  { %p241_p5 = scmp.ne.s32.totalorder %s305_s2, %s240_s22  ;;  %p244_p6 = scmp.lt.u32.totalorder %s240_s22, %s305_s2 }
  0xe7   :  { %p246_p7 = pnand %p244_p6, %p241_p5 }
  0xe9   :  { %249 = shalt.err (!%p246_p7)
}
  0xea   :  { %s255_s27 = smov 64   ;;  %s256_s28 = smov 4  }
  0xeb   :  { %172 = dma.vmem_to_hbm [thread:$0]  %s167_s20, 256, %s305_s2, [#allocation3], %s255_s27, %s255_s27, %s256_s28  }
  0xec   :  { %250 = dma.done.wait [#allocation3], 256  }
  0xed   :  { %251 = vsyncadd [#allocation3], 4294967040 }
  0xee   :  { %176 = vsyncpa [#allocation3], 1 }

</bundles_post_ra>
